<compile_context>
chip_gen: v5e
topology: v5e:2x2
jax: 0.10.0
libtpu: 0.0.40
codegen_flags: <defaults>
</compile_context>

<pallas_src>
import functools

import jax
import jax.numpy as jnp
from jax.experimental import pallas as pl
from jax.experimental.pallas import tpu as pltpu

_LANE = 128


def _reduce_kernel(x_ref, w1_ref, b1_ref, w2_ref, b2_ref,
                   a_ref, d_ref, csum_ref, *, compute_dtype):
    """Per (batch, row-tile): y = relu(x@W1+b1); emit row half, accumulate col sums."""
    t = pl.program_id(1)
    n_t = pl.num_programs(1)

    @pl.when(t == 0)
    def _():
        csum_ref[...] = jnp.zeros_like(csum_ref)

    x = x_ref[0]                                   # (tL, L, H) f32
    t_l, l, h = x.shape
    h2p = w1_ref.shape[1]
    inv_l = 1.0 / l                                # static python scalar

    # ---- first linear + ReLU (MXU; bf16 inputs, f32 accumulation) ----------
    # NOTE: keep L a multiple of 8 (f32 sublane) so these reshapes stay
    # layout-preserving.
    x2d = x.reshape(t_l * l, h).astype(compute_dtype)
    y = jnp.dot(x2d, w1_ref[...].astype(compute_dtype),
                preferred_element_type=jnp.float32)
    y = jnp.maximum(y + b1_ref[...], 0.0)          # (tL*L, H2p) f32, >= 0
    y3 = y.reshape(t_l, l, h2p)

    # ---- row half: mean over j for this tile's rows, straight to tag space --
    row_sum = jnp.sum(y3, axis=1)                  # (tL, H2p), XLU sublane reduce
    a_tile = jnp.dot((row_sum * (0.5 * inv_l)).astype(compute_dtype),
                     w2_ref[...].astype(compute_dtype),
                     preferred_element_type=jnp.float32)   # (tL, Tp)
    a_ref[0] = (a_tile + b2_ref[...]).astype(a_ref.dtype)  # fold b2 into row half

    # ---- column sums: accumulate across row tiles (plain VPU adds) ----------
    csum_ref[...] += jnp.sum(y3, axis=0)           # (L, H2p)

    @pl.when(t == n_t - 1)
    def _():
        d_full = jnp.dot((csum_ref[...] * (0.5 * inv_l)).astype(compute_dtype),
                         w2_ref[...].astype(compute_dtype),
                         preferred_element_type=jnp.float32)   # (L, Tp)
        d_ref[0] = d_full.astype(d_ref.dtype)


def _outer_add_kernel(a_ref, d_ref, o_ref):
    """out[b, i, j, :] = a[b, i, :] + d[b, j, :]  (lane-dense broadcast-add)."""
    o_ref[0] = (a_ref[0][:, None, :] + d_ref[0][None, :, :]).astype(o_ref.dtype)


def multi_nonlinear_classifier_with_cross_avg(
        x, w1, b1, w2, b2, *, compute_dtype=jnp.bfloat16, row_tile=None,
        vmem_limit_bytes=48 * 1024 * 1024):
    """x: (B, L, L, H) f32.  w1: (H, H//2), b1: (H//2,), w2: (H//2, T), b2: (T,).
    Weights are stored input-major (already transposed vs. torch.nn.Linear).
    Returns (B, L, L, T) f32."""
    B, L, L2, H = x.shape
    assert L == L2, "expected a square (B, L, L, H) feature grid"
    H2 = w1.shape[1]
    T = w2.shape[1]

    # ---- pad hidden/tag dims to full 128-lane width (exact: pads are zeros) --
    H2p = -(-H2 // _LANE) * _LANE
    Tp = -(-T // _LANE) * _LANE
    w1p = jnp.pad(w1, ((0, 0), (0, H2p - H2)))
    b1p = jnp.pad(jnp.reshape(b1, (1, H2)), ((0, 0), (0, H2p - H2)))
    w2p = jnp.pad(w2, ((0, H2p - H2), (0, Tp - T)))
    b2p = jnp.pad(jnp.reshape(b2, (1, T)), ((0, 0), (0, Tp - T)))

    # ---- row tiling: stream (tL, L, H) slabs so the full y is never built ---
    if row_tile is None:
        row_tile = L
        for cand in (64, 32, 16, 8):          # multiples of 8 (f32 sublane)
            if L % cand == 0:
                row_tile = cand
                break
    tL = row_tile
    assert L % tL == 0, "row_tile must divide L"
    nT = L // tL

    # ---- pass 1: streaming reduction to the two (L, Tp) halves --------------
    # Grid-invariant weight specs (constant index_map) are not re-DMA'd per step.
    # TODO(synk): pipeline_mode=pl.Buffered(1) on the weight specs would also
    #             drop their second (double-buffer) VMEM copy for large H*H2.
    a_half, d_half = pl.pallas_call(
        functools.partial(_reduce_kernel, compute_dtype=compute_dtype),
        out_shape=(jax.ShapeDtypeStruct((B, L, Tp), jnp.float32),
                   jax.ShapeDtypeStruct((B, L, Tp), jnp.float32)),
        grid_spec=pltpu.PrefetchScalarGridSpec(
            num_scalar_prefetch=0,
            grid=(B, nT),
            in_specs=[
                pl.BlockSpec((1, tL, L, H), lambda b, t: (b, t, 0, 0)),
                pl.BlockSpec((H, H2p), lambda b, t: (0, 0)),
                pl.BlockSpec((1, H2p), lambda b, t: (0, 0)),
                pl.BlockSpec((H2p, Tp), lambda b, t: (0, 0)),
                pl.BlockSpec((1, Tp), lambda b, t: (0, 0)),
            ],
            out_specs=[
                pl.BlockSpec((1, tL, Tp), lambda b, t: (b, t, 0)),
                pl.BlockSpec((1, L, Tp), lambda b, t: (b, 0, 0)),
            ],
            scratch_shapes=[pltpu.VMEM((L, H2p), jnp.float32)],
        ),
        compiler_params=pltpu.CompilerParams(
            dimension_semantics=("parallel", "arbitrary"),
            vmem_limit_bytes=vmem_limit_bytes),
    )(x, w1p, b1p, w2p, b2p)

    # ---- pass 2: fully-parallel, lane-dense broadcast-add epilogue ----------
    out_padded = pl.pallas_call(
        _outer_add_kernel,
        out_shape=jax.ShapeDtypeStruct((B, L, L, Tp), jnp.float32),
        grid_spec=pltpu.PrefetchScalarGridSpec(
            num_scalar_prefetch=0,
            grid=(B, nT),
            in_specs=[
                pl.BlockSpec((1, tL, Tp), lambda b, t: (b, t, 0)),
                pl.BlockSpec((1, L, Tp), lambda b, t: (b, 0, 0)),
            ],
            out_specs=pl.BlockSpec((1, tL, L, Tp), lambda b, t: (b, t, 0, 0)),
        ),
        compiler_params=pltpu.CompilerParams(
            dimension_semantics=("parallel", "parallel"),
            vmem_limit_bytes=vmem_limit_bytes),
    )(a_half, d_half)

    return out_padded[..., :T]


def _reference(x, w1, b1, w2, b2):
    """Pure-JAX reference with the module's forward semantics (eval mode)."""
    y = jnp.maximum(jnp.einsum("bijh,hk->bijk", x, w1) + b1, 0.0)
    row_avg = jnp.mean(y, axis=2, keepdims=True)
    col_avg = jnp.mean(y, axis=1, keepdims=True)
    z = jnp.maximum(0.5 * (row_avg + col_avg), 0.0)
    return jnp.einsum("bijk,kt->bijt", z, w2) + b2


if __name__ == "__main__":
    # Small, module-consistent shapes: hidden_size=32 -> H2=16, tag_size=8.
    B, L, H, T = 2, 8, 32, 8
    H2 = H // 2

    key = jax.random.PRNGKey(0)
    kx, k1, k2, k3, k4 = jax.random.split(key, 5)
    x = jax.random.normal(kx, (B, L, L, H), dtype=jnp.float32)
    w1 = jax.random.normal(k1, (H, H2), dtype=jnp.float32) * (H ** -0.5)
    b1 = jax.random.normal(k2, (H2,), dtype=jnp.float32) * 0.02
    w2 = jax.random.normal(k3, (H2, T), dtype=jnp.float32) * (H2 ** -0.5)
    b2 = jax.random.normal(k4, (T,), dtype=jnp.float32) * 0.02

    ref = _reference(x, w1, b1, w2, b2)

    # f32 MXU path: bitwise-close to the reference.
    out_f32 = multi_nonlinear_classifier_with_cross_avg(
        x, w1, b1, w2, b2, compute_dtype=jnp.float32)
    out_f32 = jax.block_until_ready(out_f32)
    assert out_f32.shape == (B, L, L, T)
    assert jnp.allclose(out_f32, ref, atol=1e-4, rtol=1e-4), "f32 path mismatch"

    # bf16 MXU inputs / f32 accumulation: the fast path on v6e / v7x.
    out_bf16 = multi_nonlinear_classifier_with_cross_avg(
        x, w1, b1, w2, b2, compute_dtype=jnp.bfloat16)
    out_bf16 = jax.block_until_ready(out_bf16)
    assert out_bf16.shape == (B, L, L, T)
    assert jnp.allclose(out_bf16, ref, atol=5e-2, rtol=5e-2), "bf16 path mismatch"

    print("KERNEL_OK")
</pallas_src>

<mosaic_0001>
module attributes {stable_mosaic.version = 11 : i64} {
  func.func @_reduce_kernel(%arg0: i32, %arg1: i32, %arg2: memref<1x8x8x32xf32, #tpu.memory_space<vmem>>, %arg3: memref<32x128xf32, #tpu.memory_space<vmem>>, %arg4: memref<1x128xf32, #tpu.memory_space<vmem>>, %arg5: memref<128x128xf32, #tpu.memory_space<vmem>>, %arg6: memref<1x128xf32, #tpu.memory_space<vmem>>, %arg7: memref<1x8x128xf32, #tpu.memory_space<vmem>>, %arg8: memref<1x8x128xf32, #tpu.memory_space<vmem>>, %arg9: memref<8x128xf32, #tpu.memory_space<vmem>>) attributes {dimension_semantics = [#tpu.dimension_semantics<parallel>, #tpu.dimension_semantics<arbitrary>], iteration_bounds = array<i64: 2, 1>, scalar_prefetch = 0 : i64, scratch_operands = 1 : i64, tpu.core_type = #tpu.core_type<tc>, window_params = [{transform_indices = @transform_0, window_bounds = array<i64: 1, 8, 8, 32>}, {pipeline_mode = #tpu.pipeline_mode<synchronous>, transform_indices = @transform_1, window_bounds = array<i64: 32, 128>}, {pipeline_mode = #tpu.pipeline_mode<synchronous>, transform_indices = @transform_2, window_bounds = array<i64: 1, 128>}, {pipeline_mode = #tpu.pipeline_mode<synchronous>, transform_indices = @transform_3, window_bounds = array<i64: 128, 128>}, {pipeline_mode = #tpu.pipeline_mode<synchronous>, transform_indices = @transform_4, window_bounds = array<i64: 1, 128>}, {transform_indices = @transform_5, window_bounds = array<i64: 1, 8, 128>}, {transform_indices = @transform_6, window_bounds = array<i64: 1, 8, 128>}]} {
    %c0_i32 = arith.constant 0 : i32
    %0 = arith.cmpi eq, %arg1, %c0_i32 : i32
    %1 = arith.extui %0 : i1 to i32
    %c0_i32_0 = arith.constant 0 : i32
    %2 = arith.cmpi ne, %1, %c0_i32_0 : i32
    scf.if %2 {
      %cst_26 = arith.constant 0.000000e+00 : f32
      %32 = vector.broadcast %cst_26 : f32 to vector<8x128xf32>
      %c0_27 = arith.constant 0 : index
      %c0_28 = arith.constant 0 : index
      %33 = vector.load %arg9[%c0_27, %c0_28] : memref<8x128xf32, #tpu.memory_space<vmem>>, vector<8x128xf32>
      tpu.vector_store %arg9[%c0_27, %c0_28], %32 {strides = array<i32>} : memref<8x128xf32, #tpu.memory_space<vmem>>, vector<8x128xf32>,
    } else {
    }
    %c0 = arith.constant 0 : index
    %c0_1 = arith.constant 0 : index
    %c0_2 = arith.constant 0 : index
    %c0_3 = arith.constant 0 : index
    %3 = vector.load %arg2[%c0, %c0_1, %c0_2, %c0_3] : memref<1x8x8x32xf32, #tpu.memory_space<vmem>>, vector<1x8x8x32xf32>
    %4 = vector.shape_cast %3 : vector<1x8x8x32xf32> to vector<8x8x32xf32>
    %5 = vector.shape_cast %4 : vector<8x8x32xf32> to vector<64x32xf32>
    %c0_4 = arith.constant 0 : index
    %c0_5 = arith.constant 0 : index
    %6 = vector.load %arg3[%c0_4, %c0_5] : memref<32x128xf32, #tpu.memory_space<vmem>>, vector<32x128xf32>
    %cst = arith.constant dense<0.000000e+00> : vector<64x128xf32>
    %7 = tpu.matmul %5, %6, %cst {dimension_numbers = #tpu.dot_dimension_numbers<[1], [0], [0], [1], [0, 0, 1, 1], [], []>} : vector<64x32xf32>, vector<32x128xf32>, vector<64x128xf32> -> vector<64x128xf32>
    %c0_6 = arith.constant 0 : index
    %c0_7 = arith.constant 0 : index
    %8 = vector.load %arg4[%c0_6, %c0_7] : memref<1x128xf32, #tpu.memory_space<vmem>>, vector<1x128xf32>
    %9 = vector.broadcast %8 : vector<1x128xf32> to vector<64x128xf32>
    %10 = arith.addf %7, %9 : vector<64x128xf32>
    %cst_8 = arith.constant 0.000000e+00 : f32
    %11 = vector.broadcast %cst_8 : f32 to vector<64x128xf32>
    %12 = arith.maximumf %10, %11 : vector<64x128xf32>
    %13 = vector.shape_cast %12 : vector<64x128xf32> to vector<8x8x128xf32>
    %cst_9 = arith.constant dense<0.000000e+00> : vector<8x128xf32>
    %14 = vector.multi_reduction <add>, %13, %cst_9 [1] : vector<8x8x128xf32> to vector<8x128xf32>
    %cst_10 = arith.constant 6.250000e-02 : f32
    %15 = vector.broadcast %cst_10 : f32 to vector<8x128xf32>
    %16 = arith.mulf %14, %15 : vector<8x128xf32>
    %c0_11 = arith.constant 0 : index
    %c0_12 = arith.constant 0 : index
    %17 = vector.load %arg5[%c0_11, %c0_12] : memref<128x128xf32, #tpu.memory_space<vmem>>, vector<128x128xf32>
    %cst_13 = arith.constant dense<0.000000e+00> : vector<8x128xf32>
    %18 = tpu.matmul %16, %17, %cst_13 {dimension_numbers = #tpu.dot_dimension_numbers<[1], [0], [0], [1], [0, 0, 1, 1], [], []>} : vector<8x128xf32>, vector<128x128xf32>, vector<8x128xf32> -> vector<8x128xf32>
    %c0_14 = arith.constant 0 : index
    %c0_15 = arith.constant 0 : index
    %19 = vector.load %arg6[%c0_14, %c0_15] : memref<1x128xf32, #tpu.memory_space<vmem>>, vector<1x128xf32>
    %20 = vector.broadcast %19 : vector<1x128xf32> to vector<8x128xf32>
    %21 = arith.addf %18, %20 : vector<8x128xf32>
    %c0_16 = arith.constant 0 : index
    %c0_17 = arith.constant 0 : index
    %c0_18 = arith.constant 0 : index
    %22 = vector.load %arg7[%c0_16, %c0_17, %c0_18] : memref<1x8x128xf32, #tpu.memory_space<vmem>>, vector<1x8x128xf32>
    %23 = vector.shape_cast %22 : vector<1x8x128xf32> to vector<8x128xf32>
    %24 = vector.shape_cast %21 : vector<8x128xf32> to vector<1x8x128xf32>
    tpu.vector_store %arg7[%c0_16, %c0_17, %c0_18], %24 {strides = array<i32>} : memref<1x8x128xf32, #tpu.memory_space<vmem>>, vector<1x8x128xf32>,
    %c0_19 = arith.constant 0 : index
    %c0_20 = arith.constant 0 : index
    %25 = vector.load %arg9[%c0_19, %c0_20] : memref<8x128xf32, #tpu.memory_space<vmem>>, vector<8x128xf32>
    %cst_21 = arith.constant dense<0.000000e+00> : vector<8x128xf32>
    %26 = vector.multi_reduction <add>, %13, %cst_21 [0] : vector<8x8x128xf32> to vector<8x128xf32>
    %27 = arith.addf %25, %26 : vector<8x128xf32>
    %c0_22 = arith.constant 0 : index
    %c0_23 = arith.constant 0 : index
    %28 = vector.load %arg9[%c0_22, %c0_23] : memref<8x128xf32, #tpu.memory_space<vmem>>, vector<8x128xf32>
    tpu.vector_store %arg9[%c0_22, %c0_23], %27 {strides = array<i32>} : memref<8x128xf32, #tpu.memory_space<vmem>>, vector<8x128xf32>,
    %c0_i32_24 = arith.constant 0 : i32
    %29 = arith.cmpi eq, %arg1, %c0_i32_24 : i32
    %30 = arith.extui %29 : i1 to i32
    %c0_i32_25 = arith.constant 0 : i32
    %31 = arith.cmpi ne, %30, %c0_i32_25 : i32
    scf.if %31 {
      %c0_26 = arith.constant 0 : index
      %c0_27 = arith.constant 0 : index
      %32 = vector.load %arg9[%c0_26, %c0_27] : memref<8x128xf32, #tpu.memory_space<vmem>>, vector<8x128xf32>
      %cst_28 = arith.constant 6.250000e-02 : f32
      %33 = vector.broadcast %cst_28 : f32 to vector<8x128xf32>
      %34 = arith.mulf %32, %33 : vector<8x128xf32>
      %c0_29 = arith.constant 0 : index
      %c0_30 = arith.constant 0 : index
      %35 = vector.load %arg5[%c0_29, %c0_30] : memref<128x128xf32, #tpu.memory_space<vmem>>, vector<128x128xf32>
      %cst_31 = arith.constant dense<0.000000e+00> : vector<8x128xf32>
      %36 = tpu.matmul %34, %35, %cst_31 {dimension_numbers = #tpu.dot_dimension_numbers<[1], [0], [0], [1], [0, 0, 1, 1], [], []>} : vector<8x128xf32>, vector<128x128xf32>, vector<8x128xf32> -> vector<8x128xf32>
      %c0_32 = arith.constant 0 : index
      %c0_33 = arith.constant 0 : index
      %c0_34 = arith.constant 0 : index
      %37 = vector.load %arg8[%c0_32, %c0_33, %c0_34] : memref<1x8x128xf32, #tpu.memory_space<vmem>>, vector<1x8x128xf32>
      %38 = vector.shape_cast %37 : vector<1x8x128xf32> to vector<8x128xf32>
      %39 = vector.shape_cast %36 : vector<8x128xf32> to vector<1x8x128xf32>
      tpu.vector_store %arg8[%c0_32, %c0_33, %c0_34], %39 {strides = array<i32>} : memref<1x8x128xf32, #tpu.memory_space<vmem>>, vector<1x8x128xf32>,
    } else {
    }
    return
  }
  func.func @transform_0(%arg0: i32, %arg1: i32) -> (i32, i32, i32, i32) {
    %c0_i32 = arith.constant 0 : i32
    %c0_i32_0 = arith.constant 0 : i32
    %c0_i32_1 = arith.constant 0 : i32
    return %arg0, %arg1, %c0_i32, %c0_i32_0 : i32, i32, i32, i32
  }
  func.func @transform_1(%arg0: i32, %arg1: i32) -> (i32, i32) {
    %c0_i32 = arith.constant 0 : i32
    %c0_i32_0 = arith.constant 0 : i32
    %c0_i32_1 = arith.constant 0 : i32
    return %c0_i32, %c0_i32_0 : i32, i32
  }
  func.func @transform_2(%arg0: i32, %arg1: i32) -> (i32, i32) {
    %c0_i32 = arith.constant 0 : i32
    %c0_i32_0 = arith.constant 0 : i32
    %c0_i32_1 = arith.constant 0 : i32
    return %c0_i32, %c0_i32_0 : i32, i32
  }
  func.func @transform_3(%arg0: i32, %arg1: i32) -> (i32, i32) {
    %c0_i32 = arith.constant 0 : i32
    %c0_i32_0 = arith.constant 0 : i32
    %c0_i32_1 = arith.constant 0 : i32
    return %c0_i32, %c0_i32_0 : i32, i32
  }
  func.func @transform_4(%arg0: i32, %arg1: i32) -> (i32, i32) {
    %c0_i32 = arith.constant 0 : i32
    %c0_i32_0 = arith.constant 0 : i32
    %c0_i32_1 = arith.constant 0 : i32
    return %c0_i32, %c0_i32_0 : i32, i32
  }
  func.func @transform_5(%arg0: i32, %arg1: i32) -> (i32, i32, i32) {
    %c0_i32 = arith.constant 0 : i32
    %c0_i32_0 = arith.constant 0 : i32
    return %arg0, %arg1, %c0_i32 : i32, i32, i32
  }
  func.func @transform_6(%arg0: i32, %arg1: i32) -> (i32, i32, i32) {
    %c0_i32 = arith.constant 0 : i32
    %c0_i32_0 = arith.constant 0 : i32
    %c0_i32_1 = arith.constant 0 : i32
    return %arg0, %c0_i32, %c0_i32_0 : i32, i32, i32
  }
}

</mosaic_0001>

<bundles_post_ra>
// kernel: tpu_custom_call.1
= control target key start
LH: loop header
LB: loop body
LE: loop exit
PB: predicated region body
PF: predicated region fallthrough
CT: control target
= control target key end

     0   :  { %s1353_s0 = inlined_call_operand.hbm [shape: f32[2,8,8,32], index: 0, kind: input, shape index: {}]   ;;  %s1354_s1 = inlined_call_operand.hbm [shape: f32[32,128], index: 1, kind: input, shape index: {}]   ;;  %s1355_s2 = inlined_call_operand.vmem [shape: f32[1,128], index: 2, kind: input, shape index: {}]   ;;  %s1356_s3 = inlined_call_operand.hbm [shape: f32[128,128], index: 3, kind: input, shape index: {}]   ;;  %s1357_s4 = inlined_call_operand.vmem [shape: f32[1,128], index: 4, kind: input, shape index: {}]   ;;  %s1358_s5 = inlined_call_operand.hbm [shape: f32[2,8,128], index: 5, kind: output, shape index: {0}]   ;;  %s1359_s6 = inlined_call_operand.hbm [shape: f32[2,8,128], index: 6, kind: output, shape index: {1}]  }
   0x1   :  { %1363 = sst [smem:[#allocation17_spill]] %s1353_s0 }
   0x2   :  { %1364 = sst [smem:[#allocation18_spill]] %s1354_s1 }
   0x3   :  { %1365 = sst [smem:[#allocation19_spill]] %s1356_s3 }
   0x4   :  { %12 = vsyncpa [#allocation4], 0 }
   0x5   :  { %14 = vsyncpa [#allocation4 + $0x1], 0 }
   0x6   :  { %15 = vsyncpa [#allocation7], 0 }
   0x7   :  { %16 = vsyncpa [#allocation5], 0 }
   0x8   :  { %18 = vsyncpa [#allocation5 + $0x1], 0 }
   0x9   :  { %19 = vsyncpa [#allocation11], 0 }
   0xa   :  { %21 = vsyncpa [#allocation11 + $0x1], 0  ;;  %s1147_s21 = smov 0   ;;  %s1149_s22 = smov 0  }
   0xb   :  { %s1151_s23 = smov 0   ;;  %s1153_s24 = smov 0  }
   0xc   :  { %s1155_s25 = smov 0   ;;  %s1157_s26 = smov 0  }
   0xd LB: > { %s772_s27 = sadd.s32 4294967295, %s1106_s26   ;;  %s773_s28 = sadd.s32 4294967294, %s1106_s26   ;;  %s1106_s26 = sphi %s1157_s26, %s27_s26   ;;  %s1102_s25 = sphi %s1155_s25, %s1382_s25   ;;  %s1098_s24 = sphi %s1153_s24, %s1381_s24   ;;  %s1094_s23 = sphi %s1151_s23, %s1380_s23   ;;  %s1090_s22 = sphi %s1149_s22, %s1379_s22   ;;  %s1086_s21 = sphi %s1147_s21, %s1378_s21  }
   0xe   : > { %p61_p0 = scmp.ne.s32.totalorder %s1090_s22, %s1086_s21  ;;  %p1183_p1 = scmp.eq.s32.totalorder %s772_s27, 0 }
   0xf   : > { %p177_p2 = scmp.eq.s32.totalorder %s773_s28, 1  ;;  %p774_p4 = scmp.ge.s32.totalorder %s1106_s26, 1 }
  0x10   : > { %p1189_p3 = por %p1183_p1, %p61_p0  ;;  %p210_p6 = scmp.lt.s32.totalorder %s1106_s26, 3 }
  0x11   : > { %p1194_p5 = por %p177_p2, %p61_p0  ;;  %s1369_s1 = sld [smem:[#allocation18_spill]] }
  0x12   : > { %p1202_p7 = pnand %p774_p4, %p210_p6  ;;  %s1108_s12 = smov [#allocation6]  }
  0x13   : > { %s223_s13 = sshll.u32 %s1108_s12, 4  ;;  %p777_p10 = scmp.ge.s32.totalorder %s1106_s26, 2  ;;  %s224_s13 = int_to_ptr.vmem [resolvable:$true] %s223_s13 }
  0x14   : > { %p820_p8 = pneg %p1202_p7  ;;  %s1371_s3 = sld [smem:[#allocation19_spill]] }
  0x15   : > { %s1360_s17 = smov 128   ;;  %s1361_s18 = smov 8  }
  0x16   : > { %p821_p9 = pnand %p820_p8, %p1183_p1  ;;  %s1111_s19 = smov [#allocation8]  }
  0x17   : > { %s221_s10 = sshll.u32 %s1369_s1, 4  ;;  %s240_s20 = sshll.u32 %s1111_s19, 4  ;;  %s222_s10 = int_to_ptr.hbm [resolvable:$true] %s221_s10  ;;  %s241_s20 = int_to_ptr.vmem [resolvable:$true] %s240_s20 }
  0x18   : > { %823 = dma.hbm_to_vmem [thread:$0]  (!%p821_p9), %s222_s10, 512, %s224_s13, [#allocation7], %s1360_s17, %s1360_s17, %s1361_s18  }
  0x19   : > { %p171_p11 = scmp.eq.s32.totalorder %s772_s27, 1  ;;  %s39_s28 = sadd.s32 1, %s1102_s25 }
  0x1a   : > { %s238_s16 = sshll.u32 %s1371_s3, 4  ;;  %p41_p12 = scmp.ge.s32.totalorder %s39_s28, 2  ;;  %s239_s16 = int_to_ptr.hbm [resolvable:$true] %s238_s16 }
  0x1b   : > { %826 = dma.hbm_to_vmem [thread:$0]  (!%p821_p9), %s239_s16, 2048, %s241_s20, [#allocation7], %s1360_s17, %s1360_s17, %s1361_s18  }
  0x1c   : > { %s48_s8 = sadd.s32 1, %s1094_s23  ;;  %p55_p13 = scmp.ne.s32.totalorder %s1094_s23, %s1090_s22 }
  0x1d   : > { %p56_p0 = scmp.eq.s32.totalorder %s1106_s26, 0  ;;  %s1384_s28 = smov (%p41_p12, %s39_s28), 0 }
  0x1e   : > { %1372 = sst [smem:[#allocation16_spill]] %s1384_s28  ;;  %p1229_p2 = por %p171_p11, %p55_p13 }
  0x1f   : > { %p840_p4 = scmp.lt.s32.totalorder %s1106_s26, 2  ;;  %s43_s10 = ssub.s32 %s1102_s25, %s1384_s28 }
  0x20   : > { %s257_s12 = sand.u32 1, %s1094_s23   ;;  %p46_p6 = scmp.eq.s32.totalorder %s43_s10, 0 }
  0x21   : > { %p57_p8 = por %p56_p0, %p55_p13  ;;  %s778_s13 = sshll.u32 %s257_s12, 6 }
  0x22   : > { %s801_s27 = sshll.u32 %s1102_s25, 6  ;;  %s1374_s0 = sld [smem:[#allocation17_spill]] }
  0x23   : > { %s1239_s14 = scalar_select %p46_p6, %s1094_s23, %s48_s8  }
  0x24   : > { %s261_s17 = scalar_lea.vmem [#allocation3], %s778_s13  ;;  %p828_p9 = pnand %p840_p4, %p57_p8 }
  0x25   : > { %s271_s18 = sshll.u32 %s261_s17, 4  ;;  %s258_s1 = scalar_lea.sflag [#allocation4], %s257_s12  ;;  %s272_s18 = int_to_ptr.vmem [resolvable:$true] %s271_s18 }
  0x26   : > { %s1375_s3 = smov 8   ;;  %s1376_s28 = smov 128  }
  0x27   : > { %283 = sbr.rel (%p1202_p7) target bundleno = 368 (0x170), region = 40  ;;  %s1252_s8 = sand.u32 (!%p1202_p7), 1, %s1090_s22  }
  0x28   : > { %s268_s19 = scalar_lea.hbm %s1374_s0, %s801_s27  ;;  %s782_s10 = sshll.u32 (!%p1202_p7), %s1252_s8, 6 }
  0x29   : > { %s269_s20 = sshll.u32 %s268_s19, 4  ;;  %s286_s17 = scalar_lea.sflag (!%p1202_p7), [#allocation4], %s1252_s8  ;;  %s270_s20 = int_to_ptr.hbm [resolvable:$true] %s269_s20 }
  0x2a   : > { %830 = dma.hbm_to_vmem [thread:$0]  (!%p828_p9), %s270_s20, 1024, %s272_s18, %s258_s1, %s1376_s28, %s1376_s28, %s1375_s3  }
  0x2b   : > { %s1256_s13 = scalar_lea.vmem (!%p1202_p7), [#allocation3], %s782_s10 }
  0x2c   : > { %1069 = dma.done.wait (%p1189_p3), %s286_s17, 1024  }
  0x2d   : > { %1071 = vsyncadd (%p1189_p3), %s286_s17, 4294966272 }
  0x2e   : > { %1073 = dma.done.wait (%p1183_p1), [#allocation7], 2560  }
  0x2f   : > { %1075 = vsyncadd (%p1183_p1), [#allocation7], 4294964736  ;;  %v351_v0 = vld [vmem:[#allocation6 + $0x18] sm:$0xff]  ;;  %v350_v1 = vld [vmem:[#allocation6 + $0x10] sm:$0xff]  ;;  %vm356_vm0 = vcmask 261120   ;;  %vm514_vm1 = vcmask 1041409  }
  0x30   : > { %393 = vmatpush.msra.mxu0 %v351_v0  ;;  %802 = vmatpush.msra.mxu3 %v351_v0  ;;  %v349_v2 = vld [vmem:[#allocation6 + $0x8] sm:$0xff]  ;;  %v348_v3 = vld [vmem:[#allocation6] sm:$0xff]  ;;  %v342_v8 = vld [vmem:[%s1256_s13 + $0x10] sm:$0xff]  ;;  %vm516_vm2 = vcmask 1042434   ;;  %vm518_vm3 = vcmask 1043459   ;;  %vm520_vm4 = vcmask 1044484  }
  0x31   : > { %v340_v4 = vld [vmem:[%s1256_s13] sm:$0xff]  ;;  %v341_v6 = vld [vmem:[%s1256_s13 + $0x8] sm:$0xff]  ;;  %v346_v9 = vld [vmem:[%s1256_s13 + $0x30] sm:$0xff]  ;;  %vm522_vm5 = vcmask 1045509   ;;  %vm524_vm6 = vcmask 1046534   ;;  %vm526_vm7 = vcmask 1047559  }
  0x32   : > { %394 = vmatpush.msra.mxu0 %v350_v1  ;;  %803 = vmatpush.msra.mxu3 %v350_v1  ;;  %v344_v5 = vld [vmem:[%s1256_s13 + $0x20] sm:$0xff]  ;;  %v345_v7 = vld [vmem:[%s1256_s13 + $0x28] sm:$0xff]  ;;  %v343_v10 = vld [vmem:[%s1256_s13 + $0x18] sm:$0xff]  ;;  %s797_s29 = sshll.u32 %s1098_s24, 3  ;;  %s785_s30 = sshll.u32 %s1252_s8, 3 }
  0x33   : > { %v347_v11 = vld [vmem:[%s1256_s13 + $0x38] sm:$0xff]  ;;  %v579_v13 = vld [vmem:[#allocation8 + $0x70] sm:$0xff]  ;;  %v578_v14 = vld [vmem:[#allocation8 + $0x68] sm:$0xff]  ;;  %s633_s28 = scalar_lea.hbm %s1359_s6, %s797_s29  ;;  %s333_s12 = scalar_lea.vmem [#allocation10], %s785_s30 }
  0x34   : > { %395 = vmatpush.msra.mxu0 %v349_v2  ;;  %804 = vmatpush.msra.mxu3 %v349_v2  ;;  %v580_v12 = vld [vmem:[#allocation8 + $0x78] sm:$0xff]  ;;  %v577_v15 = vld [vmem:[#allocation8 + $0x60] sm:$0xff]  ;;  %v575_v17 = vld [vmem:[#allocation8 + $0x50] sm:$0xff]  ;;  %s635_s27 = sshll.u32 %s333_s12, 4  ;;  %s637_s15 = sshll.u32 %s633_s28, 4  ;;  %s636_s27 = int_to_ptr.vmem [resolvable:$true] %s635_s27  ;;  %s638_s15 = int_to_ptr.hbm [resolvable:$true] %s637_s15 }
  0x35   : > { %581 = vmatpush.msra.mxu2 %v580_v12  ;;  %529 = vmatpush.msra.mxu1 %v580_v12  ;;  %v576_v16 = vld [vmem:[#allocation8 + $0x58] sm:$0xff]  ;;  %v574_v18 = vld [vmem:[#allocation8 + $0x48] sm:$0xff]  ;;  %v573_v19 = vld [vmem:[#allocation8 + $0x40] sm:$0xff]  ;;  %s619_s20 = scalar_lea.hbm %s1358_s5, %s797_s29  ;;  %s326_s24 = scalar_lea.vmem [#allocation9], %s785_s30 }
  0x36   : > { %396 = vmatpush.msra.mxu0 %v348_v3  ;;  %805 = vmatpush.msra.mxu3 %v348_v3  ;;  %v572_v20 = vld [vmem:[#allocation8 + $0x38] sm:$0xff]  ;;  %v571_v21 = vld [vmem:[#allocation8 + $0x30] sm:$0xff]  ;;  %v570_v22 = vld [vmem:[#allocation8 + $0x28] sm:$0xff]  ;;  %s621_s13 = sshll.u32 %s326_s24, 4  ;;  %s623_s1 = sshll.u32 %s619_s20, 4  ;;  %s622_s13 = int_to_ptr.vmem [resolvable:$true] %s621_s13  ;;  %s624_s1 = int_to_ptr.hbm [resolvable:$true] %s623_s1 }
  0x37   : > { %787 = vmatmul.msk.f32.vlgmr.msra.gmra.mxu0 %vm356_vm0, %v340_v4  ;;  %791 = vmatmul.msk.f32.vlgmr.msra.gmra.mxu3 %vm356_vm0, %v344_v5  ;;  %v569_v24 = vld [vmem:[#allocation8 + $0x20] sm:$0xff]  ;;  %v568_v26 = vld [vmem:[#allocation8 + $0x18] sm:$0xff]  ;;  %v567_v27 = vld [vmem:[#allocation8 + $0x10] sm:$0xff]  ;;  %s608_s3 = scalar_lea.sflag [#allocation11], %s1252_s8  ;;  %s1002_s11 = sshra.s32 %s638_s15, 4  ;;  %s1003_s11 = int_to_ptr.hbm [resolvable:$true] %s1002_s11 }
  0x38   : > { %582 = vmatpush.msra.mxu2 %v579_v13  ;;  %530 = vmatpush.msra.mxu1 %v579_v13  ;;  %v1285_v25 = vld [vmem:[%s1355_s2] ss:$0 sm:$0xff]  ;;  %v566_v30 = vld [vmem:[#allocation8 + $0x8] sm:$0xff]  ;;  %s1004_s18 = scalar_lea.hbm %s1003_s11, 8  ;;  %s1008_s16 = scalar_lea.hbm %s1359_s6, 16 }
  0x39   : > { %v565_v32 = vld [vmem:[#allocation8] sm:$0xff]  ;;  %p1005_p1 = scmp.ne.s32.totalorder %s1003_s11, %s1004_s18  ;;  %p1009_p11 = scmp.lt.s32.totalorder %s1003_s11, %s1359_s6 }
  0x3a   : > { %583 = vmatpush.msra.mxu2 %v578_v14  ;;  %531 = vmatpush.msra.mxu1 %v578_v14  ;;  %p1010_p12 = scmp.lt.s32.totalorder %s1008_s16, %s1004_s18 }
  0x3b   : > { %p1006_p3 = pnand %p1005_p1, %p1229_p2 }
  0x3c   : > { %584 = vmatpush.msra.mxu2 %v577_v15  ;;  %532 = vmatpush.msra.mxu1 %v577_v15  ;;  %p1011_p13 = por %p1010_p12, %p1009_p11 }
  0x3d   : > { %p1007_p7 = pneg %p1006_p3 }
  0x3e   : > { %585 = vmatpush.msra.mxu2 %v576_v16  ;;  %533 = vmatpush.msra.mxu1 %v576_v16 }
  0x3f   : > { %788 = vmatmul.msk.f32.gmra.mxu0 %vm356_vm0, %v341_v6  ;;  %792 = vmatmul.msk.f32.gmra.mxu3 %vm356_vm0, %v345_v7  ;;  %p1012_p0 = pnand %p1011_p13, %p1007_p7 }
  0x40   : > { %586 = vmatpush.msra.mxu2 %v575_v17  ;;  %534 = vmatpush.msra.mxu1 %v575_v17 }
  0x42   : > { %587 = vmatpush.msra.mxu2 %v574_v18  ;;  %535 = vmatpush.msra.mxu1 %v574_v18 }
  0x44   : > { %588 = vmatpush.msra.mxu2 %v573_v19  ;;  %536 = vmatpush.msra.mxu1 %v573_v19 }
  0x46   : > { %589 = vmatpush.msra.mxu2 %v572_v20  ;;  %537 = vmatpush.msra.mxu1 %v572_v20 }
  0x47   : > { %789 = vmatmul.msk.f32.gmra.mxu0 %vm356_vm0, %v342_v8  ;;  %793 = vmatmul.msk.f32.gmra.mxu3 %vm356_vm0, %v346_v9 }
  0x48   : > { %590 = vmatpush.msra.mxu2 %v571_v21  ;;  %538 = vmatpush.msra.mxu1 %v571_v21 }
  0x4a   : > { %591 = vmatpush.msra.mxu2 %v570_v22  ;;  %539 = vmatpush.msra.mxu1 %v570_v22 }
  0x4c   : > { %592 = vmatpush.msra.mxu2 %v569_v24  ;;  %540 = vmatpush.msra.mxu1 %v569_v24 }
  0x4e   : > { %593 = vmatpush.msra.mxu2 %v568_v26  ;;  %541 = vmatpush.msra.mxu1 %v568_v26 }
  0x4f   : > { %790 = vmatmul.msk.f32.gmra.mxu0 %vm356_vm0, %v343_v10  ;;  %794 = vmatmul.msk.f32.gmra.mxu3 %vm356_vm0, %v347_v11 }
  0x50   : > { %594 = vmatpush.msra.mxu2 %v567_v27  ;;  %542 = vmatpush.msra.mxu1 %v567_v27 }
  0x52   : > { %595 = vmatpush.msra.mxu2 %v566_v30  ;;  %543 = vmatpush.msra.mxu1 %v566_v30 }
  0x54   : > { %596 = vmatpush.msra.mxu2 %v565_v32  ;;  %544 = vmatpush.msra.mxu1 %v565_v32 }
  0xb4   : > { %v398_v23 = vpop.f32.mrf.mxu0 }
  0xb5   : > { %v399_v28 = vadd.f32 %v1285_v25, %v398_v23 }
  0xb7   : > { %v422_v34 = vmax.f32 %v399_v28, 0.0 }
  0xb9   : > { %v430_v38 = vrot.slane %v422_v34, 4 }
  0xba   : > { %v410_v29 = vpop.f32.mrf.mxu3 }
  0xbb   : > { %v411_v35 = vadd.f32 %v1285_v25, %v410_v29  ;;  %v431_v45 = vadd.f32 %v430_v38, %v422_v34 }
  0xbc   : > { %v401_v31 = vpop.f32.mrf.mxu0 }
  0xbd   : > { %v402_v33 = vadd.f32 %v1285_v25, %v401_v31  ;;  %v426_v39 = vmax.f32 %v411_v35, 0.0  ;;  %v432_v51 = vrot.slane %v431_v45, 2 }
  0xbf   : > { %v423_v36 = vmax.f32 %v402_v33, 0.0  ;;  %v454_v46 = vrot.slane %v426_v39, 4  ;;  %v433_v63 = vadd.f32 %v432_v51, %v431_v45 }
  0xc1   : > { %v436_v37 = vrot.slane %v423_v36, 4  ;;  %v455_v52 = vadd.f32 %v454_v46, %v426_v39  ;;  %v551_v60 = vadd.f32 %v423_v36, %v422_v34  ;;  %v434_v11 = vrot.slane %v433_v63, 1 }
  0xc2   : > { %v413_v40 = vpop.f32.mrf.mxu3 }
  0xc3   : > { %v414_v41 = vadd.f32 %v1285_v25, %v413_v40  ;;  %v437_v43 = vadd.f32 %v436_v37, %v423_v36  ;;  %v456_v0 = vrot.slane %v455_v52, 2  ;;  %v435_v24 = vadd.f32 %v434_v11, %v433_v63 }
  0xc4   : > { %v404_v42 = vpop.f32.mrf.mxu0 }
  0xc5   : > { %v427_v44 = vmax.f32 %v414_v41, 0.0  ;;  %v405_v47 = vadd.f32 %v1285_v25, %v404_v42  ;;  %v438_v50 = vrot.slane %v437_v43, 2  ;;  %v457_v12 = vadd.f32 %v456_v0, %v455_v52 }
  0xc6   : > { %v478_v37 = vmul.f32 0.0625, %v435_v24 }
  0xc7   : > { %v460_v48 = vrot.slane %v427_v44, 4  ;;  %v424_v49 = vmax.f32 %v405_v47, 0.0  ;;  %v439_v59 = vadd.f32 %v438_v50, %v437_v43  ;;  %v458_v26 = vrot.slane %v457_v12, 1 }
  0xc9   : > { %v461_v53 = vadd.f32 %v460_v48, %v427_v44  ;;  %v442_v54 = vrot.slane %v424_v49, 4  ;;  %v552_v3 = vadd.f32 %v551_v60, %v424_v49  ;;  %v440_v7 = vrot.slane %v439_v59, 1 }
  0xca   : > { %v416_v55 = vpop.f32.mrf.mxu3 }
  0xcb   : > { %v417_v56 = vadd.f32 %v1285_v25, %v416_v55  ;;  %v443_v57 = vadd.f32 %v442_v54, %v424_v49  ;;  %v462_v1 = vrot.slane %v461_v53, 2  ;;  %v441_v20 = vadd.f32 %v440_v7, %v439_v59 }
  0xcc   : > { %v407_v58 = vpop.f32.mrf.mxu0 }
  0xcd   : > { %v428_v61 = vmax.f32 %v417_v56, 0.0  ;;  %v408_v62 = vadd.f32 %v1285_v25, %v407_v58  ;;  %v444_v2 = vrot.slane %v443_v57, 2  ;;  %v463_v13 = vadd.f32 %v462_v1, %v461_v53 }
  0xce   : > { %v479_v33 = vmul.f32 0.0625, %v441_v20 }
  0xcf   : > { %v466_v4 = vrot.slane %v428_v61, 4  ;;  %v425_v5 = vmax.f32 %v408_v62, 0.0  ;;  %v445_v6 = vadd.f32 %v444_v2, %v443_v57  ;;  %v464_v29 = vrot.slane %v463_v13, 1 }
  0xd0   : > { %v515_v46 = vsel %vm514_vm1, %v479_v33, %v478_v37 }
  0xd1   : > { %v467_v8 = vadd.f32 %v466_v4, %v428_v61  ;;  %v448_v9 = vrot.slane %v425_v5, 4  ;;  %v553_v10 = vadd.f32 %v552_v3, %v425_v5  ;;  %v446_v14 = vrot.slane %v445_v6, 1 }
  0xd2   : > { %v419_v15 = vpop.f32.mrf.mxu3  ;;  %v465_v40 = vadd.f32 %v464_v29, %v463_v13 }
  0xd3   : > { %v468_v16 = vrot.slane %v467_v8, 2  ;;  %v449_v17 = vadd.f32 %v448_v9, %v425_v5  ;;  %v554_v18 = vadd.f32 %v553_v10, %v426_v39  ;;  %v420_v19 = vadd.f32 %v1285_v25, %v419_v15 }
  0xd4   : > { %v447_v27 = vadd.f32 %v446_v14, %v445_v6  ;;  %v459_v25 = vadd.f32 %v458_v26, %v457_v12  ;;  %v483_v51 = vmul.f32 0.0625, %v465_v40 }
  0xd5   : > { %v450_v21 = vrot.slane %v449_v17, 2  ;;  %v429_v22 = vmax.f32 %v420_v19, 0.0  ;;  %v555_v23 = vadd.f32 %v554_v18, %v427_v44  ;;  %v469_v28 = vadd.f32 %v468_v16, %v467_v8 }
  0xd6   : > { %v480_v38 = vmul.f32 0.0625, %v447_v27  ;;  %v482_v47 = vmul.f32 0.0625, %v459_v25 }
  0xd7   : > { %v451_v30 = vadd.f32 %v450_v21, %v449_v17  ;;  %v472_v31 = vrot.slane %v429_v22, 4  ;;  %v556_v32 = vadd.f32 %v555_v23, %v428_v61  ;;  %v470_v39 = vrot.slane %v469_v28, 1  ;;  %v897_v61 = vld [vmem:[%s1357_s4] ss:$0 sm:$0xff] }
  0xd8   : > { %v517_v49 = vsel %vm516_vm2, %v480_v38, %v515_v46 }
  0xd9   : > { %v452_v34 = vrot.slane %v451_v30, 1  ;;  %v473_v35 = vadd.f32 %v472_v31, %v429_v22  ;;  %v557_v36 = vadd.f32 %v556_v32, %v429_v22  ;;  %v471_v48 = vadd.f32 %v470_v39, %v469_v28 }
  0xdb   : > { %v453_v41 = vadd.f32 %v452_v34, %v451_v30  ;;  %v474_v42 = vrot.slane %v473_v35, 2  ;;  %v564_v43 = vmul.f32 0.0625, %v557_v36  ;;  %v484_v56 = vmul.f32 0.0625, %v471_v48 }
  0xdd   : > { %v481_v44 = vmul.f32 0.0625, %v453_v41  ;;  %597 = vmatmul.f32.vlgmr.msra.gmra.mxu2 %v564_v43  ;;  %v475_v45 = vadd.f32 %v474_v42, %v473_v35 }
  0xdf   : > { %v476_v50 = vrot.slane %v475_v45, 1  ;;  %v519_v52 = vsel %vm518_vm3, %v481_v44, %v517_v49 }
  0xe0   : > { %v521_v53 = vsel %vm520_vm4, %v482_v47, %v519_v52 }
  0xe1   : > { %v477_v54 = vadd.f32 %v476_v50, %v475_v45  ;;  %v523_v55 = vsel %vm522_vm5, %v483_v51, %v521_v53 }
  0xe2   : > { %v525_v58 = vsel %vm524_vm6, %v484_v56, %v523_v55 }
  0xe3   : > { %v485_v57 = vmul.f32 0.0625, %v477_v54 }
  0xe5   : > { %v527_v59 = vsel %vm526_vm7, %v485_v57, %v525_v58 }
  0xe6   : > { %545 = vmatmul.f32.vlgmr.msra.gmra.mxu1 %v527_v59 }
 0x160   : > { %v598_v60 = vpop.f32.mrf.mxu2 }
 0x161   : > { %601 = vst [vmem:[%s333_s12] sm:$0xff] %v598_v60 }
 0x162   : > { %1015 = shalt.err (!%p1012_p0)
}
 0x163   : > { %817 = dma.vmem_to_hbm [thread:$0]  (%p1229_p2), %s636_s27, 128, %s638_s15, %s608_s3   ;;  %v546_v62 = vpop.f32.mrf.mxu1 }
 0x164   : > { %v547_v63 = vadd.f32 %v897_v61, %v546_v62  ;;  %s603_s30 = scalar_lea.sflag [#allocation5], %s1252_s8  ;;  %s1030_s12 = sshra.s32 %s624_s1, 4  ;;  %s1031_s12 = int_to_ptr.hbm [resolvable:$true] %s1030_s12 }
 0x165   : > { %s1032_s20 = scalar_lea.hbm %s1031_s12, 8  ;;  %s1036_s17 = scalar_lea.hbm %s1358_s5, 16 }
 0x166   : > { %549 = vst [vmem:[%s326_s24] sm:$0xff] %v547_v63  ;;  %p1033_p4 = scmp.ne.s32.totalorder %s1031_s12, %s1032_s20  ;;  %p1037_p9 = scmp.lt.s32.totalorder %s1031_s12, %s1358_s5 }
 0x167   : > { %p1038_p1 = scmp.lt.s32.totalorder %s1036_s17, %s1032_s20 }
 0x168   : > { %p1034_p6 = pnand %p1033_p4, %p1229_p2 }
 0x169   : > { %p1039_p3 = por %p1038_p1, %p1037_p9 }
 0x16a   : > { %p1035_p8 = pneg %p1034_p6 }
 0x16c   : > { %p1040_p7 = pnand %p1039_p3, %p1035_p8 }
 0x16e   : > { %1043 = shalt.err (!%p1040_p7)
}
 0x16f   : > { %816 = dma.vmem_to_hbm [thread:$0]  (%p1229_p2), %s622_s13, 128, %s624_s1, %s603_s30  }
 0x170 PF: > { %s649_s8 = sand.u32 1, %s1086_s21   ;;  %p832_p11 = pnand %p777_p10, %p1194_p5 }
 0x171   : > { %s650_s27 = scalar_lea.sflag [#allocation5], %s649_s8 }
 0x172   : > { %p833_p12 = pneg %p832_p11 }
 0x174   : > { %1077 = dma.done.wait (%p833_p12), %s650_s27, 128  }
 0x175   : > { %1079 = vsyncadd (%p833_p12), %s650_s27, 4294967168  ;;  %s660_s15 = scalar_lea.sflag [#allocation11], %s649_s8 }
 0x176   : > { %1081 = dma.done.wait (%p833_p12), %s660_s15, 128  }
 0x177   : > { %1083 = vsyncadd (%p833_p12), %s660_s15, 4294967168  ;;  %s27_s26 = sadd.s32 1, %s1106_s26   ;;  %s1377_s9 = sld [smem:[#allocation16_spill]] }
 0x178   : > { %p24_p13 = scmp.ge.s32.totalorder %s27_s26, 4   ;;  %s1378_s21 = smov %s1090_s22 }
 0x179   : > { %s1379_s22 = smov %s1094_s23  ;;  %s1380_s23 = smov %s1239_s14 }
 0x17a   : > { %s1381_s24 = smov %s1102_s25  ;;  %26 = sbr.rel (!%p24_p13) target bundleno = 13 (0xd), region = 118 }
 0x17d   : > { %s1382_s25 = smov %s1377_s9 }
 0x17f   :  { %666 = vsyncpa [#allocation4], 1 }
 0x180   :  { %668 = vsyncpa [#allocation4 + $0x1], 1 }
 0x181   :  { %669 = vsyncpa [#allocation7], 1 }
 0x182   :  { %670 = vsyncpa [#allocation5], 1 }
 0x183   :  { %672 = vsyncpa [#allocation5 + $0x1], 1 }
 0x184   :  { %673 = vsyncpa [#allocation11], 1 }
 0x185   :  { %675 = vsyncpa [#allocation11 + $0x1], 1 }

</bundles_post_ra>
